<compile_context>
chip_gen: v5e
topology: v5e:2x2
jax: 0.10.0
libtpu: 0.0.40
codegen_flags: <defaults>
</compile_context>

<pallas_src>
import numpy as np
import jax
import jax.numpy as jnp
from jax.experimental import pallas as pl
from jax.experimental.pallas import tpu as pltpu


# ----------------------------------------------------------------------------
# Pallas kernel: T clusters (= Mb rows) per grid step, everything 2-D.
#   A_ref   : (Mb, Mb) block-diagonal averaging matrix (1/K within a cluster)
#   pos_ref : (Mb, 3)  gathered positions, K consecutive rows per cluster
#   feat_ref: (Mb, D)  gathered features
#   w1_ref  : (8, 2D)  rows 0:3 = [w1a[:3] | w2a[3:6]], row 3 = [w1a[3] | 0],
#                      rows 4:7 = [0 | w2a[:3]], row 7 = [b1a | b2a]
#   w2_ref  : (3D+1, 2D) rows 0:2D   = blockdiag(w1b, w2b),
#                        rows 2D:3D  = [I_D | I_D]  (residual add of feat),
#                        row  3D     = [b1b | b2b]
#   out_ref : (Mb, 2D) = [h_pos | h_geo]
# ----------------------------------------------------------------------------
def lpe_kernel(A_ref, pos_ref, feat_ref, w1_ref, w2_ref, out_ref):
    D = feat_ref.shape[1]
    D2 = 2 * D

    p = pos_ref[...].astype(jnp.float32)      # (Mb, 3)
    f = feat_ref[...].astype(jnp.float32)     # (Mb, D)
    A = A_ref[...]                            # (Mb, Mb)

    # per-cluster centroid, broadcast back to every row, via one MXU matmul
    cog = jnp.dot(A, p, preferred_element_type=jnp.float32)     # (Mb, 3)
    local_p = p - cog                                           # (Mb, 3)
    nrm = jnp.sqrt(jnp.sum(local_p * local_p, axis=1, keepdims=True))  # (Mb, 1)
    # avg = per-cluster mean of local_p (mathematically ~0; kept for parity
    # with the PyTorch reference)
    avg = jnp.dot(A, local_p, preferred_element_type=jnp.float32)       # (Mb, 3)

    # --- fused first layers of mlp_1a / mlp_2a -> (Mb, 2D) ---
    w1 = w1_ref[...]                                            # (8, 2D)
    z = (jnp.dot(local_p, w1[0:3, :], preferred_element_type=jnp.float32)
         + nrm * w1[3:4, :]
         + jnp.dot(avg, w1[4:7, :], preferred_element_type=jnp.float32)
         + w1[7:8, :])
    h = jnp.maximum(z, 0.0)

    # --- fused second layers + residual add of feat, single (Mb, 2D) store ---
    w2 = w2_ref[...]                                            # (3D+1, 2D)
    out = (jnp.dot(h, w2[0:D2, :], preferred_element_type=jnp.float32)
           + jnp.dot(f, w2[D2:D2 + D, :], preferred_element_type=jnp.float32)
           + w2[D2 + D:D2 + D + 1, :])
    out_ref[...] = out.astype(out_ref.dtype)


def lpe_block_pallas(pos, feat, cluster_idx, params, *, clusters_per_block=32):
    """pos: (B, N, 3) f32, feat: (B, N, D) f32, cluster_idx: (B, C, K) int32
    (a permutation of range(N) per batch).  Returns (h_pos, h_geo), each
    (B, N, D)."""
    w1a, b1a, w1b, b1b, w2a, b2a, w2b, b2b = params
    B, N, D = feat.shape
    _, C, K = cluster_idx.shape
    BC = B * C
    D2 = 2 * D
    out_dtype = feat.dtype
    f32 = jnp.float32
    # TODO(synk): on v6e/v7x, casting feat/out to bf16 here (keeping f32
    # accumulation inside the kernel) roughly halves HBM traffic.

    # ---- fuse / pack the weights (done once per call, tiny) ----
    w_lp = jnp.concatenate([w1a[0:3, :], w2a[3:6, :]], axis=1)          # (3, 2D)
    w_n = jnp.concatenate([w1a[3:4, :], jnp.zeros((1, D), f32)], axis=1)
    w_avg = jnp.concatenate([jnp.zeros((3, D), f32), w2a[0:3, :]], axis=1)
    b1f = jnp.concatenate([b1a.reshape(1, D), b2a.reshape(1, D)], axis=1)
    w1pack = jnp.concatenate([w_lp, w_n, w_avg, b1f], axis=0)           # (8, 2D)

    zD = jnp.zeros((D, D), f32)
    eyeD = jnp.eye(D, dtype=f32)
    w2f = jnp.concatenate(
        [jnp.concatenate([w1b, zD], axis=1),
         jnp.concatenate([zD, w2b], axis=1)], axis=0)                    # (2D, 2D)
    w_dup = jnp.concatenate([eyeD, eyeD], axis=1)                        # (D, 2D)
    b2f = jnp.concatenate([b1b.reshape(1, D), b2b.reshape(1, D)], axis=1)
    w2pack = jnp.concatenate([w2f, w_dup, b2f], axis=0)                  # (3D+1, 2D)

    # ---- glue: gather points per cluster into a flat (BC*K, .) row layout ----
    idx_flat = cluster_idx.reshape(B, C * K)
    pos_g = jnp.take_along_axis(pos, idx_flat[..., None], axis=1).reshape(BC * K, 3)
    feat_g = jnp.take_along_axis(feat, idx_flat[..., None], axis=1).reshape(BC * K, D)

    # ---- batching: T clusters per grid step (pad cluster count if needed) ----
    T = min(clusters_per_block, BC)
    Mb = T * K
    assert Mb % 8 == 0, "rows-per-block must be sublane aligned (K=8 here)"
    BC_pad = ((BC + T - 1) // T) * T
    if BC_pad != BC:
        pad_rows = (BC_pad - BC) * K
        pos_g = jnp.concatenate([pos_g, jnp.zeros((pad_rows, 3), pos_g.dtype)], 0)
        feat_g = jnp.concatenate([feat_g, jnp.zeros((pad_rows, D), feat_g.dtype)], 0)
    G = BC_pad // T

    # block-diagonal averaging matrix: rows of the same cluster average together
    cid = jnp.arange(Mb, dtype=jnp.int32) // K
    A = (cid[:, None] == cid[None, :]).astype(f32) / float(K)            # (Mb, Mb)

    grid_spec = pltpu.PrefetchScalarGridSpec(
        num_scalar_prefetch=0,
        grid=(G,),
        in_specs=[
            pl.BlockSpec((Mb, Mb), lambda i: (0, 0)),            # A (resident)
            pl.BlockSpec((Mb, 3), lambda i: (i, 0)),             # pos rows
            pl.BlockSpec((Mb, D), lambda i: (i, 0)),             # feat rows
            pl.BlockSpec((8, D2), lambda i: (0, 0)),             # packed layer-1
            pl.BlockSpec((3 * D + 1, D2), lambda i: (0, 0)),     # packed layer-2
        ],
        out_specs=pl.BlockSpec((Mb, D2), lambda i: (i, 0)),      # [h_pos | h_geo]
    )

    rows = BC_pad * K
    flops = 2 * rows * (6 * D2 + D2 * D2 + D * D2) + 12 * G * Mb * Mb
    bytes_accessed = 4 * (Mb * Mb + rows * (3 + D + D2) + 8 * D2 + (3 * D + 1) * D2)
    cost = pl.CostEstimate(flops=flops, transcendentals=rows,
                           bytes_accessed=bytes_accessed)

    out = pl.pallas_call(
        lpe_kernel,
        out_shape=jax.ShapeDtypeStruct((rows, D2), out_dtype),
        grid_spec=grid_spec,
        compiler_params=pltpu.CompilerParams(
            dimension_semantics=("parallel",)),
        cost_estimate=cost,
    )(A, pos_g, feat_g, w1pack, w2pack)

    # ---- glue: split the lane-dense slab and scatter back (no argsort) ----
    out = out[: BC * K].reshape(B, C * K, D2)
    h_pos_g = out[..., :D]
    h_geo_g = out[..., D:]
    b_idx = jnp.arange(B, dtype=jnp.int32)[:, None]
    h_pos = jnp.zeros((B, N, D), out_dtype).at[b_idx, idx_flat].set(
        h_pos_g, unique_indices=True)
    h_geo = jnp.zeros((B, N, D), out_dtype).at[b_idx, idx_flat].set(
        h_geo_g, unique_indices=True)
    return h_pos, h_geo


# ----------------------------------------------------------------------------
# Pure-numpy reference (mirrors the PyTorch forward loop exactly).
# ----------------------------------------------------------------------------
def lpe_block_reference(pos, feat, cluster_idx, params):
    w1a, b1a, w1b, b1b, w2a, b2a, w2b, b2b = [np.asarray(p) for p in params]
    pos = np.asarray(pos)
    feat = np.asarray(feat)
    B, N, D = feat.shape
    h_pos = np.empty((B, N, D), np.float32)
    h_geo = np.empty((B, N, D), np.float32)
    for b in range(B):
        for c in range(cluster_idx.shape[1]):
            idx = np.asarray(cluster_idx[b, c])
            p = pos[b][idx]
            f = feat[b][idx]
            cog = p.mean(0, keepdims=True)
            lp = p - cog
            n = np.linalg.norm(lp, axis=1, keepdims=True)
            x1 = np.concatenate([lp, n], axis=1)
            e_pos = np.maximum(x1 @ w1a + b1a, 0.0) @ w1b + b1b
            h_pos[b][idx] = f + e_pos
            avg = lp.mean(0, keepdims=True)
            x2 = np.concatenate([np.broadcast_to(avg, lp.shape), lp], axis=1)
            e_geo = np.maximum(x2 @ w2a + b2a, 0.0) @ w2b + b2b
            h_geo[b][idx] = f + e_geo
    return h_pos, h_geo


if __name__ == "__main__":
    # Small shapes consistent with the module: d_embed=32, kmeans_ratio=8.
    B, N, D_EMBED = 2, 64, 32
    KMEANS_RATIO = 8
    C = N // KMEANS_RATIO          # clusters per batch
    K = KMEANS_RATIO               # points per cluster

    key = jax.random.PRNGKey(0)
    k_pos, k_feat, k_perm, k_w = jax.random.split(key, 4)

    pos = jax.random.normal(k_pos, (B, N, 3), dtype=jnp.float32)
    feat = jax.random.normal(k_feat, (B, N, D_EMBED), dtype=jnp.float32)

    # kmeans_idx_dict_batchlist equivalent: per batch, a random partition of
    # the N points into C clusters of K points each.
    perms = jnp.stack([jax.random.permutation(jax.random.fold_in(k_perm, b), N)
                       for b in range(B)])
    cluster_idx = perms.reshape(B, C, K).astype(jnp.int32)

    # Synthetic parameters (torch.nn.Linear shapes, stored transposed as
    # (d_in, d_out)); biases kept as (1, d_out).
    kws = jax.random.split(k_w, 8)
    scale = 0.1
    w1a = scale * jax.random.normal(kws[0], (4, D_EMBED), jnp.float32)
    b1a = scale * jax.random.normal(kws[1], (1, D_EMBED), jnp.float32)
    w1b = scale * jax.random.normal(kws[2], (D_EMBED, D_EMBED), jnp.float32)
    b1b = scale * jax.random.normal(kws[3], (1, D_EMBED), jnp.float32)
    w2a = scale * jax.random.normal(kws[4], (6, D_EMBED), jnp.float32)
    b2a = scale * jax.random.normal(kws[5], (1, D_EMBED), jnp.float32)
    w2b = scale * jax.random.normal(kws[6], (D_EMBED, D_EMBED), jnp.float32)
    b2b = scale * jax.random.normal(kws[7], (1, D_EMBED), jnp.float32)
    params = (w1a, b1a, w1b, b1b, w2a, b2a, w2b, b2b)

    h_pos, h_geo = jax.jit(lpe_block_pallas)(pos, feat, cluster_idx, params)
    jax.block_until_ready((h_pos, h_geo))

    # Sanity check against the straightforward reference implementation.
    ref_pos, ref_geo = lpe_block_reference(pos, feat, cluster_idx, params)
    np.testing.assert_allclose(np.asarray(h_pos), ref_pos, rtol=1e-2, atol=1e-2)
    np.testing.assert_allclose(np.asarray(h_geo), ref_geo, rtol=1e-2, atol=1e-2)

    print("KERNEL_OK")
</pallas_src>

<mosaic_0001>
module attributes {stable_mosaic.version = 11 : i64} {
  func.func @lpe_kernel(%arg0: i32, %arg1: memref<128x128xf32, #tpu.memory_space<vmem>>, %arg2: memref<128x3xf32, #tpu.memory_space<vmem>>, %arg3: memref<128x32xf32, #tpu.memory_space<vmem>>, %arg4: memref<8x64xf32, #tpu.memory_space<vmem>>, %arg5: memref<97x64xf32, #tpu.memory_space<vmem>>, %arg6: memref<128x64xf32, #tpu.memory_space<vmem>>) attributes {dimension_semantics = [#tpu.dimension_semantics<parallel>], iteration_bounds = array<i64: 1>, scalar_prefetch = 0 : i64, scratch_operands = 0 : i64, tpu.core_type = #tpu.core_type<tc>, window_params = [{pipeline_mode = #tpu.pipeline_mode<synchronous>, transform_indices = @transform_0, window_bounds = array<i64: 128, 128>}, {transform_indices = @transform_1, window_bounds = array<i64: 128, 3>}, {transform_indices = @transform_2, window_bounds = array<i64: 128, 32>}, {pipeline_mode = #tpu.pipeline_mode<synchronous>, transform_indices = @transform_3, window_bounds = array<i64: 8, 64>}, {pipeline_mode = #tpu.pipeline_mode<synchronous>, transform_indices = @transform_4, window_bounds = array<i64: 97, 64>}, {transform_indices = @transform_5, window_bounds = array<i64: 128, 64>}]} {
    %c0 = arith.constant 0 : index
    %c0_0 = arith.constant 0 : index
    %0 = vector.load %arg2[%c0, %c0_0] : memref<128x3xf32, #tpu.memory_space<vmem>>, vector<128x3xf32>
    %c0_1 = arith.constant 0 : index
    %c0_2 = arith.constant 0 : index
    %1 = vector.load %arg3[%c0_1, %c0_2] : memref<128x32xf32, #tpu.memory_space<vmem>>, vector<128x32xf32>
    %c0_3 = arith.constant 0 : index
    %c0_4 = arith.constant 0 : index
    %2 = vector.load %arg1[%c0_3, %c0_4] : memref<128x128xf32, #tpu.memory_space<vmem>>, vector<128x128xf32>
    %cst = arith.constant dense<0.000000e+00> : vector<128x3xf32>
    %3 = tpu.matmul %2, %0, %cst {dimension_numbers = #tpu.dot_dimension_numbers<[1], [0], [0], [1], [0, 0, 1, 1], [], []>} : vector<128x128xf32>, vector<128x3xf32>, vector<128x3xf32> -> vector<128x3xf32>
    %4 = arith.subf %0, %3 : vector<128x3xf32>
    %5 = arith.mulf %4, %4 : vector<128x3xf32>
    %cst_5 = arith.constant dense<0.000000e+00> : vector<128xf32>
    %6 = vector.multi_reduction <add>, %5, %cst_5 [1] : vector<128x3xf32> to vector<128xf32>
    %7 = vector.shape_cast %6 : vector<128xf32> to vector<128x1xf32>
    %8 = math.sqrt %7 : vector<128x1xf32>
    %cst_6 = arith.constant dense<0.000000e+00> : vector<128x3xf32>
    %9 = tpu.matmul %2, %4, %cst_6 {dimension_numbers = #tpu.dot_dimension_numbers<[1], [0], [0], [1], [0, 0, 1, 1], [], []>} : vector<128x128xf32>, vector<128x3xf32>, vector<128x3xf32> -> vector<128x3xf32>
    %c0_7 = arith.constant 0 : index
    %c0_8 = arith.constant 0 : index
    %10 = vector.load %arg4[%c0_7, %c0_8] : memref<8x64xf32, #tpu.memory_space<vmem>>, vector<8x64xf32>
    %11 = vector.extract_strided_slice %10 {offsets = [0, 0], sizes = [3, 64], strides = [1, 1]} : vector<8x64xf32> to vector<3x64xf32>
    %cst_9 = arith.constant dense<0.000000e+00> : vector<128x64xf32>
    %12 = tpu.matmul %4, %11, %cst_9 {dimension_numbers = #tpu.dot_dimension_numbers<[1], [0], [0], [1], [0, 0, 1, 1], [], []>} : vector<128x3xf32>, vector<3x64xf32>, vector<128x64xf32> -> vector<128x64xf32>
    %13 = vector.extract_strided_slice %10 {offsets = [3, 0], sizes = [1, 64], strides = [1, 1]} : vector<8x64xf32> to vector<1x64xf32>
    %14 = vector.broadcast %8 : vector<128x1xf32> to vector<128x64xf32>
    %15 = vector.broadcast %13 : vector<1x64xf32> to vector<128x64xf32>
    %16 = arith.mulf %14, %15 : vector<128x64xf32>
    %17 = arith.addf %12, %16 : vector<128x64xf32>
    %18 = vector.extract_strided_slice %10 {offsets = [4, 0], sizes = [3, 64], strides = [1, 1]} : vector<8x64xf32> to vector<3x64xf32>
    %cst_10 = arith.constant dense<0.000000e+00> : vector<128x64xf32>
    %19 = tpu.matmul %9, %18, %cst_10 {dimension_numbers = #tpu.dot_dimension_numbers<[1], [0], [0], [1], [0, 0, 1, 1], [], []>} : vector<128x3xf32>, vector<3x64xf32>, vector<128x64xf32> -> vector<128x64xf32>
    %20 = arith.addf %17, %19 : vector<128x64xf32>
    %21 = vector.extract_strided_slice %10 {offsets = [7, 0], sizes = [1, 64], strides = [1, 1]} : vector<8x64xf32> to vector<1x64xf32>
    %22 = vector.broadcast %21 : vector<1x64xf32> to vector<128x64xf32>
    %23 = arith.addf %20, %22 : vector<128x64xf32>
    %cst_11 = arith.constant 0.000000e+00 : f32
    %24 = vector.broadcast %cst_11 : f32 to vector<128x64xf32>
    %25 = arith.maximumf %23, %24 : vector<128x64xf32>
    %c0_12 = arith.constant 0 : index
    %c0_13 = arith.constant 0 : index
    %26 = vector.load %arg5[%c0_12, %c0_13] : memref<97x64xf32, #tpu.memory_space<vmem>>, vector<97x64xf32>
    %27 = vector.extract_strided_slice %26 {offsets = [0, 0], sizes = [64, 64], strides = [1, 1]} : vector<97x64xf32> to vector<64x64xf32>
    %cst_14 = arith.constant dense<0.000000e+00> : vector<128x64xf32>
    %28 = tpu.matmul %25, %27, %cst_14 {dimension_numbers = #tpu.dot_dimension_numbers<[1], [0], [0], [1], [0, 0, 1, 1], [], []>} : vector<128x64xf32>, vector<64x64xf32>, vector<128x64xf32> -> vector<128x64xf32>
    %29 = vector.extract_strided_slice %26 {offsets = [64, 0], sizes = [32, 64], strides = [1, 1]} : vector<97x64xf32> to vector<32x64xf32>
    %cst_15 = arith.constant dense<0.000000e+00> : vector<128x64xf32>
    %30 = tpu.matmul %1, %29, %cst_15 {dimension_numbers = #tpu.dot_dimension_numbers<[1], [0], [0], [1], [0, 0, 1, 1], [], []>} : vector<128x32xf32>, vector<32x64xf32>, vector<128x64xf32> -> vector<128x64xf32>
    %31 = arith.addf %28, %30 : vector<128x64xf32>
    %32 = vector.extract_strided_slice %26 {offsets = [96, 0], sizes = [1, 64], strides = [1, 1]} : vector<97x64xf32> to vector<1x64xf32>
    %33 = vector.broadcast %32 : vector<1x64xf32> to vector<128x64xf32>
    %34 = arith.addf %31, %33 : vector<128x64xf32>
    %c0_16 = arith.constant 0 : index
    %c0_17 = arith.constant 0 : index
    %35 = vector.load %arg6[%c0_16, %c0_17] : memref<128x64xf32, #tpu.memory_space<vmem>>, vector<128x64xf32>
    tpu.vector_store %arg6[%c0_16, %c0_17], %34 {strides = array<i32>} : memref<128x64xf32, #tpu.memory_space<vmem>>, vector<128x64xf32>,
    return
  }
  func.func @transform_0(%arg0: i32) -> (i32, i32) {
    %c0_i32 = arith.constant 0 : i32
    %c0_i32_0 = arith.constant 0 : i32
    %c0_i32_1 = arith.constant 0 : i32
    return %c0_i32, %c0_i32_0 : i32, i32
  }
  func.func @transform_1(%arg0: i32) -> (i32, i32) {
    %c0_i32 = arith.constant 0 : i32
    %c0_i32_0 = arith.constant 0 : i32
    return %arg0, %c0_i32 : i32, i32
  }
  func.func @transform_2(%arg0: i32) -> (i32, i32) {
    %c0_i32 = arith.constant 0 : i32
    %c0_i32_0 = arith.constant 0 : i32
    return %arg0, %c0_i32 : i32, i32
  }
  func.func @transform_3(%arg0: i32) -> (i32, i32) {
    %c0_i32 = arith.constant 0 : i32
    %c0_i32_0 = arith.constant 0 : i32
    %c0_i32_1 = arith.constant 0 : i32
    return %c0_i32, %c0_i32_0 : i32, i32
  }
  func.func @transform_4(%arg0: i32) -> (i32, i32) {
    %c0_i32 = arith.constant 0 : i32
    %c0_i32_0 = arith.constant 0 : i32
    %c0_i32_1 = arith.constant 0 : i32
    return %c0_i32, %c0_i32_0 : i32, i32
  }
  func.func @transform_5(%arg0: i32) -> (i32, i32) {
    %c0_i32 = arith.constant 0 : i32
    %c0_i32_0 = arith.constant 0 : i32
    return %arg0, %c0_i32 : i32, i32
  }
}

</mosaic_0001>

<bundles_post_ra>
// kernel: lpe_block_pallas.1
= control target key start
LH: loop header
LB: loop body
LE: loop exit
PB: predicated region body
PF: predicated region fallthrough
CT: control target
= control target key end

     0   :  { %vm537_vm0 = vcmask 1042432   ;;  %vm165_vm1 = vcmask 23552   ;;  %vm784_vm2 = vcmask 261120   ;;  %vm898_vm8 = vcmask 523264   ;;  %s1889_s1 = inlined_call_operand.vmem [shape: f32[128,3], index: 1, kind: input, shape index: {}]   ;;  %s1890_s0 = inlined_call_operand.vmem [shape: f32[128,128], index: 0, kind: input, shape index: {}]   ;;  %s1891_s3 = inlined_call_operand.vmem [shape: f32[8,64], index: 3, kind: input, shape index: {}]   ;;  %s1892_s4 = inlined_call_operand.vmem [shape: f32[97,64], index: 4, kind: input, shape index: {}]   ;;  %s1893_s2 = inlined_call_operand.vmem [shape: f32[128,32], index: 2, kind: input, shape index: {}]   ;;  %s1894_s5 = inlined_call_operand.vmem [shape: f32[128,64], index: 5, kind: output, shape index: {}]  }
   0x1   :  { %v1183_v0 = vld [vmem:[%s1889_s1 + $0x78] sm:$0xff]  ;;  %v1188_v1 = vld [vmem:[%s1889_s1 + $0x70] sm:$0xff]  ;;  %v1194_v2 = vld [vmem:[%s1889_s1 + $0x68] sm:$0xff] }
   0x2   :  { %68 = vmatpush.msra.mxu0 %v1183_v0  ;;  %v1200_v3 = vld [vmem:[%s1889_s1 + $0x60] sm:$0xff]  ;;  %v1206_v4 = vld [vmem:[%s1889_s1 + $0x58] sm:$0xff]  ;;  %v1212_v5 = vld [vmem:[%s1889_s1 + $0x50] sm:$0xff] }
   0x3   :  { %v1218_v6 = vld [vmem:[%s1889_s1 + $0x48] sm:$0xff]  ;;  %v1224_v7 = vld [vmem:[%s1889_s1 + $0x40] sm:$0xff]  ;;  %v1230_v8 = vld [vmem:[%s1889_s1 + $0x38] sm:$0xff] }
   0x4   :  { %69 = vmatpush.msra.mxu0 %v1188_v1  ;;  %v1236_v9 = vld [vmem:[%s1889_s1 + $0x30] sm:$0xff]  ;;  %v1242_v10 = vld [vmem:[%s1889_s1 + $0x28] sm:$0xff]  ;;  %v1248_v11 = vld [vmem:[%s1889_s1 + $0x20] sm:$0xff] }
   0x5   :  { %v1254_v12 = vld [vmem:[%s1889_s1 + $0x18] sm:$0xff]  ;;  %v22_v13 = vld [vmem:[%s1889_s1 + $0x10] sm:$0xff]  ;;  %v21_v14 = vld [vmem:[%s1889_s1 + $0x8] sm:$0xff] }
   0x6   :  { %70 = vmatpush.msra.mxu0 %v1194_v2  ;;  %v20_v15 = vld [vmem:[%s1889_s1] sm:$0xff]  ;;  %v1276_v17 = vld [vmem:[%s1890_s0 + $0x8] sm:$0xff]  ;;  %v1282_v18 = vld [vmem:[%s1890_s0 + $0x10] sm:$0xff] }
   0x7   :  { %v1270_v16 = vld [vmem:[%s1890_s0] sm:$0xff]  ;;  %v1288_v19 = vld [vmem:[%s1890_s0 + $0x18] sm:$0xff]  ;;  %v1300_v21 = vld [vmem:[%s1890_s0 + $0x28] sm:$0xff] }
   0x8   :  { %71 = vmatpush.msra.mxu0 %v1200_v3  ;;  %v1294_v20 = vld [vmem:[%s1890_s0 + $0x20] sm:$0xff]  ;;  %v1306_v22 = vld [vmem:[%s1890_s0 + $0x30] sm:$0xff]  ;;  %v1312_v23 = vld [vmem:[%s1890_s0 + $0x38] sm:$0xff] }
   0x9   :  { %v1318_v24 = vld [vmem:[%s1890_s0 + $0x40] sm:$0xff]  ;;  %v1324_v25 = vld [vmem:[%s1890_s0 + $0x48] sm:$0xff]  ;;  %v1330_v26 = vld [vmem:[%s1890_s0 + $0x50] sm:$0xff] }
   0xa   :  { %72 = vmatpush.msra.mxu0 %v1206_v4  ;;  %v1336_v27 = vld [vmem:[%s1890_s0 + $0x58] sm:$0xff]  ;;  %v1342_v28 = vld [vmem:[%s1890_s0 + $0x60] sm:$0xff]  ;;  %v1357_v30 = vld [vmem:[%s1890_s0 + $0x68] sm:$0xff] }
   0xb   :  { %v1347_v29 = vld [vmem:[%s1891_s3] sm:$0xff]  ;;  %v1363_v31 = vld [vmem:[%s1890_s0 + $0x70] sm:$0xff]  ;;  %v1369_v32 = vld [vmem:[%s1890_s0 + $0x78] sm:$0xff] }
   0xc   :  { %73 = vmatpush.msra.mxu0 %v1212_v5  ;;  %1115 = vmatpush.msk.msra.mxu2 %vm537_vm0, %v1347_v29 }
   0xe   :  { %74 = vmatpush.msra.mxu0 %v1218_v6 }
  0x10   :  { %75 = vmatpush.msra.mxu0 %v1224_v7 }
  0x12   :  { %76 = vmatpush.msra.mxu0 %v1230_v8 }
  0x14   :  { %77 = vmatpush.msra.mxu0 %v1236_v9 }
  0x16   :  { %78 = vmatpush.msra.mxu0 %v1242_v10 }
  0x18   :  { %79 = vmatpush.msra.mxu0 %v1248_v11 }
  0x1a   :  { %80 = vmatpush.msra.mxu0 %v1254_v12 }
  0x1c   :  { %81 = vmatpush.msra.mxu0 %v22_v13 }
  0x1e   :  { %82 = vmatpush.msra.mxu0 %v21_v14 }
  0x20   :  { %83 = vmatpush.msra.mxu0 %v20_v15 }
  0x21   :  { %84 = vmatmul.f32.vlgmr.msra.gmra.mxu0 %v1270_v16 }
  0x22   :  { %1049 = vmatpush.msk.msrb.mxu0 %vm537_vm0, %v1347_v29 }
  0x29   :  { %87 = vmatmul.f32.gmra.mxu0 %v1276_v17 }
  0x31   :  { %90 = vmatmul.f32.gmra.mxu0 %v1282_v18 }
  0x39   :  { %93 = vmatmul.f32.gmra.mxu0 %v1288_v19 }
  0x41   :  { %96 = vmatmul.f32.gmra.mxu0 %v1294_v20 }
  0x49   :  { %99 = vmatmul.f32.gmra.mxu0 %v1300_v21 }
  0x51   :  { %102 = vmatmul.f32.gmra.mxu0 %v1306_v22 }
  0x59   :  { %105 = vmatmul.f32.gmra.mxu0 %v1312_v23 }
  0x61   :  { %108 = vmatmul.f32.gmra.mxu0 %v1318_v24 }
  0x69   :  { %111 = vmatmul.f32.gmra.mxu0 %v1324_v25 }
  0x71   :  { %114 = vmatmul.f32.gmra.mxu0 %v1330_v26 }
  0x79   :  { %117 = vmatmul.f32.gmra.mxu0 %v1336_v27 }
  0x81   :  { %120 = vmatmul.f32.gmra.mxu0 %v1342_v28 }
  0x89   :  { %123 = vmatmul.f32.gmra.mxu0 %v1357_v30 }
  0x91   :  { %126 = vmatmul.f32.gmra.mxu0 %v1363_v31 }
  0x99   :  { %129 = vmatmul.f32.gmra.mxu0 %v1369_v32 }
  0x9e   :  { %v85_v33 = vpop.f32.mrf.mxu0 }
  0x9f   :  { %v1372_v34 = vsub.f32 %v20_v15, %v85_v33 }
  0xa1   :  { %1050 = vmatmul.msk.f32.vlgmr.msrb.gmra.mxu0 %vm165_vm1, %v1372_v34  ;;  %v149_v35 = vmul.f32 %v1372_v34, %v1372_v34 }
  0xa3   :  { %v166_v36 = vsel %vm165_vm1, %v149_v35, 0.0 }
  0xa4   :  { %167 = vadd.xlane.f32.xlu0 %v166_v36 }
  0xa6   :  { %v88_v37 = vpop.f32.mrf.mxu0 }
  0xa7   :  { %v1379_v38 = vsub.f32 %v21_v14, %v88_v37 }
  0xa9   :  { %1051 = vmatmul.msk.f32.gmra.mxu0 %vm165_vm1, %v1379_v38  ;;  %v150_v39 = vmul.f32 %v1379_v38, %v1379_v38 }
  0xab   :  { %v169_v40 = vsel %vm165_vm1, %v150_v39, 0.0 }
  0xac   :  { %170 = vadd.xlane.f32.xlu0 %v169_v40 }
  0xae   :  { %v91_v41 = vpop.f32.mrf.mxu0 }
  0xaf   :  { %v1386_v42 = vsub.f32 %v22_v13, %v91_v41 }
  0xb1   :  { %1052 = vmatmul.msk.f32.gmra.mxu0 %vm165_vm1, %v1386_v42  ;;  %v151_v43 = vmul.f32 %v1386_v42, %v1386_v42 }
  0xb3   :  { %v172_v44 = vsel %vm165_vm1, %v151_v43, 0.0 }
  0xb4   :  { %173 = vadd.xlane.f32.xlu1 %v172_v44 }
  0xb6   :  { %v94_v45 = vpop.f32.mrf.mxu0 }
  0xb7   :  { %v1394_v46 = vsub.f32 %v1254_v12, %v94_v45 }
  0xb9   :  { %1053 = vmatmul.msk.f32.gmra.mxu0 %vm165_vm1, %v1394_v46  ;;  %v152_v47 = vmul.f32 %v1394_v46, %v1394_v46 }
  0xbb   :  { %v175_v48 = vsel %vm165_vm1, %v152_v47, 0.0 }
  0xbc   :  { %176 = vadd.xlane.f32.xlu1 %v175_v48 }
  0xbe   :  { %v97_v49 = vpop.f32.mrf.mxu0 }
  0xbf   :  { %v1402_v50 = vsub.f32 %v1248_v11, %v97_v49 }
  0xc1   :  { %1054 = vmatmul.msk.f32.gmra.mxu0 %vm165_vm1, %v1402_v50  ;;  %v153_v51 = vmul.f32 %v1402_v50, %v1402_v50 }
  0xc3   :  { %v178_v52 = vsel %vm165_vm1, %v153_v51, 0.0 }
  0xc4   :  { %179 = vadd.xlane.f32.xlu2 %v178_v52 }
  0xc6   :  { %v100_v53 = vpop.f32.mrf.mxu0 }
  0xc7   :  { %v1410_v54 = vsub.f32 %v1242_v10, %v100_v53 }
  0xc9   :  { %1055 = vmatmul.msk.f32.gmra.mxu0 %vm165_vm1, %v1410_v54  ;;  %v154_v55 = vmul.f32 %v1410_v54, %v1410_v54 }
  0xcb   :  { %v181_v56 = vsel %vm165_vm1, %v154_v55, 0.0 }
  0xcc   :  { %182 = vadd.xlane.f32.xlu2 %v181_v56 }
  0xce   :  { %v103_v57 = vpop.f32.mrf.mxu0 }
  0xcf   :  { %v1418_v58 = vsub.f32 %v1236_v9, %v103_v57 }
  0xd1   :  { %1056 = vmatmul.msk.f32.vlgmr.msra.gmra.mxu2 %vm165_vm1, %v1418_v58  ;;  %v155_v59 = vmul.f32 %v1418_v58, %v1418_v58 }
  0xd3   :  { %v184_v60 = vsel %vm165_vm1, %v155_v59, 0.0 }
  0xd4   :  { %185 = vadd.xlane.f32.xlu0 %v184_v60 }
  0xd6   :  { %v106_v61 = vpop.f32.mrf.mxu0 }
  0xd7   :  { %v140_v62 = vsub.f32 %v1230_v8, %v106_v61 }
  0xd9   :  { %1057 = vmatmul.msk.f32.gmra.mxu2 %vm165_vm1, %v140_v62  ;;  %v156_v63 = vmul.f32 %v140_v62, %v140_v62 }
  0xdb   :  { %v187_v10 = vsel %vm165_vm1, %v156_v63, 0.0 }
  0xdc   :  { %188 = vadd.xlane.f32.xlu1 %v187_v10 }
  0xde   :  { %v109_v9 = vpop.f32.mrf.mxu0 }
  0xdf   :  { %v141_v11 = vsub.f32 %v1224_v7, %v109_v9 }
  0xe1   :  { %1058 = vmatmul.msk.f32.gmra.mxu2 %vm165_vm1, %v141_v11  ;;  %v157_v12 = vmul.f32 %v141_v11, %v141_v11 }
  0xe3   :  { %v190_v13 = vsel %vm165_vm1, %v157_v12, 0.0 }
  0xe4   :  { %191 = vadd.xlane.f32.xlu2 %v190_v13  ;;  %v771_v13 = vld [vmem:[%s1892_s4] sm:$0xff] }
  0xe6   :  { %v112_v14 = vpop.f32.mrf.mxu0 }
  0xe7   :  { %v142_v15 = vsub.f32 %v1218_v6, %v112_v14  ;;  %v36_v14 = vld [vmem:[%s1893_s2] sm:$0xff] }
  0xe9   :  { %1059 = vmatmul.msk.f32.gmra.mxu2 %vm165_vm1, %v142_v15  ;;  %v158_v8 = vmul.f32 %v142_v15, %v142_v15 }
  0xeb   :  { %v193_v33 = vsel %vm165_vm1, %v158_v8, 0.0 }
  0xec   :  { %194 = vadd.xlane.f32.xlu0 %v193_v33 }
  0xee   :  { %v115_v35 = vpop.f32.mrf.mxu0 }
  0xef   :  { %v143_v36 = vsub.f32 %v1212_v5, %v115_v35 }
  0xf1   :  { %1060 = vmatmul.msk.f32.gmra.mxu2 %vm165_vm1, %v143_v36  ;;  %v159_v7 = vmul.f32 %v143_v36, %v143_v36 }
  0xf3   :  { %v196_v37 = vsel %vm165_vm1, %v159_v7, 0.0 }
  0xf4   :  { %197 = vadd.xlane.f32.xlu1 %v196_v37 }
  0xf6   :  { %v118_v39 = vpop.f32.mrf.mxu0 }
  0xf7   :  { %v144_v40 = vsub.f32 %v1206_v4, %v118_v39 }
  0xf9   :  { %1061 = vmatmul.msk.f32.gmra.mxu2 %vm165_vm1, %v144_v40  ;;  %v160_v6 = vmul.f32 %v144_v40, %v144_v40 }
  0xfb   :  { %v199_v41 = vsel %vm165_vm1, %v160_v6, 0.0 }
  0xfc   :  { %200 = vadd.xlane.f32.xlu2 %v199_v41 }
  0xfe   :  { %v121_v43 = vpop.f32.mrf.mxu0 }
  0xff   :  { %v145_v44 = vsub.f32 %v1200_v3, %v121_v43 }
 0x101   :  { %1062 = vmatmul.msk.f32.gmra.mxu2 %vm165_vm1, %v145_v44  ;;  %v161_v5 = vmul.f32 %v145_v44, %v145_v44 }
 0x103   :  { %v202_v45 = vsel %vm165_vm1, %v161_v5, 0.0 }
 0x104   :  { %203 = vadd.xlane.f32.xlu0 %v202_v45 }
 0x106   :  { %v124_v47 = vpop.f32.mrf.mxu0 }
 0x107   :  { %v146_v48 = vsub.f32 %v1194_v2, %v124_v47 }
 0x109   :  { %1063 = vmatmul.msk.f32.gmra.mxu2 %vm165_vm1, %v146_v48  ;;  %v162_v4 = vmul.f32 %v146_v48, %v146_v48 }
 0x10b   :  { %v205_v49 = vsel %vm165_vm1, %v162_v4, 0.0 }
 0x10c   :  { %206 = vadd.xlane.f32.xlu1 %v205_v49 }
 0x10e   :  { %v127_v51 = vpop.f32.mrf.mxu0 }
 0x10f   :  { %v147_v52 = vsub.f32 %v1188_v1, %v127_v51  ;;  %v606_v1 = vrot.slane %v1347_v29, 4 }
 0x111   :  { %1064 = vmatmul.msk.f32.gmra.mxu2 %vm165_vm1, %v147_v52  ;;  %v163_v3 = vmul.f32 %v147_v52, %v147_v52  ;;  %1116 = vmatpush.msk.msra.mxu3 %vm537_vm0, %v606_v1 }
 0x113   :  { %v208_v53 = vsel %vm165_vm1, %v163_v3, 0.0 }
 0x114   :  { %209 = vadd.xlane.f32.xlu2 %v208_v53  ;;  %v1557_v53 = vperm.slane %v1347_v29, 3 }
 0x116   :  { %v130_v55 = vpop.f32.mrf.mxu0 }
 0x117   :  { %v148_v56 = vsub.f32 %v1183_v0, %v130_v55 }
 0x119   :  { %406 = vmatpush.msra.mxu1 %v148_v56  ;;  %1065 = vmatmul.msk.f32.gmra.mxu2 %vm165_vm1, %v148_v56  ;;  %v164_v2 = vmul.f32 %v148_v56, %v148_v56 }
 0x11b   :  { %407 = vmatpush.msra.mxu1 %v147_v52  ;;  %v211_v57 = vsel %vm165_vm1, %v164_v2, 0.0  ;;  %v38_v52 = vld [vmem:[%s1893_s2 + $0x10] sm:$0xff] }
 0x11c   :  { %212 = vadd.xlane.f32.xlu0 %v211_v57 }
 0x11d   :  { %408 = vmatpush.msra.mxu1 %v146_v48 }
 0x11e   :  { %v558_v47 = vpop.f32.mrf.mxu0 }
 0x11f   :  { %409 = vmatpush.msra.mxu1 %v145_v44 }
 0x121   :  { %410 = vmatpush.msra.mxu1 %v144_v40  ;;  %v37_v40 = vld [vmem:[%s1893_s2 + $0x8] sm:$0xff] }
 0x123   :  { %411 = vmatpush.msra.mxu1 %v143_v36 }
 0x125   :  { %412 = vmatpush.msra.mxu1 %v142_v15 }
 0x127   :  { %413 = vmatpush.msra.mxu1 %v141_v11 }
 0x129   :  { %414 = vmatpush.msra.mxu1 %v140_v62  ;;  %v1526_v62 = vpop.xlane.xlu1 %173 }
 0x12a   :  { %vm245_vm7 = vcmp.eq.f32.partialorder %v1526_v62, inf  ;;  %vm247_vm9 = vcmp.eq.f32.partialorder %v1526_v62, 0.0 }
 0x12b   :  { %415 = vmatpush.msra.mxu1 %v1418_v58 }
 0x12d   :  { %416 = vmatpush.msra.mxu1 %v1410_v54  ;;  %v772_v54 = vld [vmem:[%s1892_s4 + $0x8] sm:$0xff] }
 0x12f   :  { %417 = vmatpush.msra.mxu1 %v1402_v50  ;;  %v779_v50 = vld [vmem:[%s1892_s4 + $0x40] sm:$0xff] }
 0x131   :  { %418 = vmatpush.msra.mxu1 %v1394_v46  ;;  %v1538_v36 = vpop.xlane.xlu1 %176 }
 0x132   :  { %vm257_vm10 = vcmp.eq.f32.partialorder %v1538_v36, inf  ;;  %vm259_vm11 = vcmp.eq.f32.partialorder %v1538_v36, 0.0 }
 0x133   :  { %419 = vmatpush.msra.mxu1 %v1386_v42  ;;  %v168_v42 = vpop.xlane.xlu0 %167 }
 0x134   :  { %1118 = vrsqrt.f32 %v168_v42  ;;  %vm221_vm3 = vcmp.eq.f32.partialorder %v168_v42, inf  ;;  %v224_v3 = vand.u32 2147483648, %v168_v42  ;;  %vm223_vm4 = vcmp.eq.f32.partialorder %v168_v42, 0.0 }
 0x135   :  { %420 = vmatpush.msra.mxu1 %v1379_v38  ;;  %v773_v38 = vld [vmem:[%s1892_s4 + $0x10] sm:$0xff] }
 0x137   :  { %421 = vmatpush.msra.mxu1 %v1372_v34  ;;  %v1547_v6 = vpop.xlane.xlu2 %179 }
 0x138   :  { %422 = vmatmul.f32.vlgmr.msra.gmra.mxu1 %v1270_v16  ;;  %vm269_vm12 = vcmp.eq.f32.partialorder %v1547_v6, inf  ;;  %vm271_vm13 = vcmp.eq.f32.partialorder %v1547_v6, 0.0 }
 0x139   :  { %1066 = vmatpush.msk.msrb.mxu1 %vm537_vm0, %v606_v1 }
 0x13a   :  { %v1119_v60 = vpop.eup %1118 }
 0x13b   :  { %v1522_v59 = vpop.xlane.xlu0 %170  ;;  %v215_v61 = vmul.f32 %v1119_v60, %v168_v42 }
 0x13c   :  { %1120 = vrsqrt.f32 %v1522_v59  ;;  %vm233_vm5 = vcmp.eq.f32.partialorder %v1522_v59, inf  ;;  %vm235_vm6 = vcmp.eq.f32.partialorder %v1522_v59, 0.0 }
 0x13d   :  { %v216_v10 = vmul.f32 %v1119_v60, %v215_v61  ;;  %1122 = vrsqrt.f32 %v1526_v62  ;;  %v40_v61 = vld [vmem:[%s1893_s2 + $0x20] sm:$0xff] }
 0x13e   :  { %1124 = vrsqrt.f32 %v1538_v36 }
 0x13f   :  { %v217_v11 = vmul.f32 0.5, %v216_v10  ;;  %1126 = vrsqrt.f32 %v1547_v6 }
 0x140   :  { %425 = vmatmul.f32.gmra.mxu1 %v1276_v17 }
 0x141   :  { %v218_v33 = vsub.f32 1.5, %v217_v11 }
 0x142   :  { %v1121_v9 = vpop.eup %1120 }
 0x143   :  { %v227_v12 = vmul.f32 %v1121_v9, %v1522_v59  ;;  %v1123_v8 = vpop.eup %1122  ;;  %v219_v37 = vmul.f32 %v1119_v60, %v218_v33 }
 0x144   :  { %v239_v7 = vmul.f32 %v1123_v8, %v1526_v62  ;;  %v1125_v45 = vpop.eup %1124 }
 0x145   :  { %v228_v35 = vmul.f32 %v1121_v9, %v227_v12  ;;  %v220_v44 = vmul.f32 %v219_v37, %v168_v42  ;;  %v251_v51 = vmul.f32 %v1125_v45, %v1538_v36 }
 0x146   :  { %v240_v41 = vmul.f32 %v1123_v8, %v239_v7 }
 0x147   :  { %v229_v39 = vmul.f32 0.5, %v228_v35  ;;  %v222_v4 = vsel %vm221_vm3, %v168_v42, %v220_v44  ;;  %v252_v1 = vmul.f32 %v1125_v45, %v251_v51  ;;  %v260_v44 = vand.u32 2147483648, %v1538_v36 }
 0x148   :  { %428 = vmatmul.f32.gmra.mxu1 %v1282_v18  ;;  %v241_v48 = vmul.f32 0.5, %v240_v41  ;;  %v225_v55 = vsel %vm223_vm4, %v224_v3, %v222_v4  ;;  %v41_v41 = vld [vmem:[%s1893_s2 + $0x28] sm:$0xff] }
 0x149   :  { %v230_v5 = vsub.f32 1.5, %v229_v39 }
 0x14a   :  { %v242_v56 = vsub.f32 1.5, %v241_v48 }
 0x14b   :  { %v231_v49 = vmul.f32 %v1121_v9, %v230_v5 }
 0x14d   :  { %v232_v57 = vmul.f32 %v231_v49, %v1522_v59 }
 0x14f   :  { %v1598_v39 = vpop.xlane.xlu1 %188 }
 0x150   :  { %431 = vmatmul.f32.gmra.mxu1 %v1288_v19  ;;  %v782_v19 = vld [vmem:[%s1892_s4 + $0x58] sm:$0xff]  ;;  %vm305_vm3 = vcmp.eq.f32.partialorder %v1598_v39, inf  ;;  %vm307_vm4 = vcmp.eq.f32.partialorder %v1598_v39, 0.0 }
 0x151   :  { %845 = vmatpush.msrb.mxu2 %v782_v19  ;;  %v234_v19 = vsel %vm233_vm5, %v1522_v59, %v232_v57 }
 0x154   :  { %v1604_v5 = vpop.f32.mrf.mxu2 }
 0x158   :  { %434 = vmatmul.f32.gmra.mxu1 %v1294_v20  ;;  %v778_v20 = vld [vmem:[%s1892_s4 + $0x38] sm:$0xff] }
 0x159   :  { %955 = vmatpush.msrb.mxu3 %v778_v20  ;;  %v253_v20 = vmul.f32 0.5, %v252_v1 }
 0x160   :  { %437 = vmatmul.f32.gmra.mxu1 %v1300_v21 }
 0x168   :  { %440 = vmatmul.f32.gmra.mxu1 %v1306_v22  ;;  %v777_v22 = vld [vmem:[%s1892_s4 + $0x30] sm:$0xff] }
 0x169   :  { %956 = vmatpush.msrb.mxu3 %v777_v22  ;;  %v39_v22 = vld [vmem:[%s1893_s2 + $0x18] sm:$0xff] }
 0x170   :  { %443 = vmatmul.f32.gmra.mxu1 %v1312_v23 }
 0x178   :  { %446 = vmatmul.f32.gmra.mxu1 %v1318_v24  ;;  %v781_v24 = vld [vmem:[%s1892_s4 + $0x50] sm:$0xff] }
 0x179   :  { %846 = vmatpush.msrb.mxu2 %v781_v24  ;;  %v561_v24 = vpop.f32.mrf.mxu0 }
 0x180   :  { %449 = vmatmul.f32.gmra.mxu1 %v1324_v25  ;;  %v776_v25 = vld [vmem:[%s1892_s4 + $0x28] sm:$0xff] }
 0x181   :  { %957 = vmatpush.msrb.mxu3 %v776_v25  ;;  %v1574_v25 = vperm.slane %v1347_v29, 7  ;;  %v564_v11 = vpop.f32.mrf.mxu0 }
 0x188   :  { %452 = vmatmul.f32.gmra.mxu1 %v1330_v26 }
 0x189   :  { %v567_v3 = vpop.f32.mrf.mxu0 }
 0x190   :  { %455 = vmatmul.f32.gmra.mxu1 %v1336_v27 }
 0x198   :  { %458 = vmatmul.f32.gmra.mxu1 %v1342_v28  ;;  %v775_v28 = vld [vmem:[%s1892_s4 + $0x20] sm:$0xff] }
 0x199   :  { %958 = vmatpush.msrb.mxu3 %v775_v28 }
 0x1a0   :  { %461 = vmatmul.f32.gmra.mxu1 %v1357_v30 }
 0x1a8   :  { %464 = vmatmul.f32.gmra.mxu1 %v1363_v31  ;;  %v780_v31 = vld [vmem:[%s1892_s4 + $0x48] sm:$0xff] }
 0x1a9   :  { %847 = vmatpush.msrb.mxu2 %v780_v31  ;;  %v254_v31 = vsub.f32 1.5, %v253_v20  ;;  %v42_v20 = vld [vmem:[%s1893_s2 + $0x30] sm:$0xff] }
 0x1ab   :  { %848 = vmatpush.msrb.mxu2 %v779_v50  ;;  %v255_v50 = vmul.f32 %v1125_v45, %v254_v31  ;;  %v570_v31 = vpop.f32.mrf.mxu0 }
 0x1ac   :  { %1083 = vmatmul.msk.f32.vlgmr.msrb.gmra.mxu2 %vm784_vm2, %v36_v14 }
 0x1b0   :  { %467 = vmatmul.f32.gmra.mxu1 %v1369_v32  ;;  %v774_v32 = vld [vmem:[%s1892_s4 + $0x18] sm:$0xff] }
 0x1b1   :  { %959 = vmatpush.msrb.mxu3 %v774_v32 }
 0x1b3   :  { %960 = vmatpush.msrb.mxu3 %v773_v38 }
 0x1b4   :  { %1084 = vmatmul.msk.f32.gmra.mxu2 %vm784_vm2, %v37_v40 }
 0x1b5   :  { %v423_v0 = vpop.f32.mrf.mxu1  ;;  %961 = vmatpush.msrb.mxu3 %v772_v54 }
 0x1b7   :  { %962 = vmatpush.msrb.mxu3 %v771_v13  ;;  %v256_v13 = vmul.f32 %v255_v50, %v1538_v36 }
 0x1b8   :  { %1067 = vmatmul.msk.f32.vlgmr.msrb.gmra.mxu1 %vm165_vm1, %v423_v0  ;;  %v1560_v0 = vpop.xlane.xlu2 %182 }
 0x1b9   :  { %1128 = vrsqrt.f32 %v1560_v0  ;;  %vm281_vm14 = vcmp.eq.f32.partialorder %v1560_v0, inf  ;;  %v284_v50 = vand.u32 2147483648, %v1560_v0  ;;  %vm283_vm15 = vcmp.eq.f32.partialorder %v1560_v0, 0.0 }
 0x1bc   :  { %1085 = vmatmul.msk.f32.gmra.mxu2 %vm784_vm2, %v38_v52 }
 0x1bd   :  { %v426_v16 = vpop.f32.mrf.mxu1 }
 0x1c0   :  { %1068 = vmatmul.msk.f32.gmra.mxu1 %vm165_vm1, %v426_v16  ;;  %v1127_v16 = vpop.eup %1126 }
 0x1c1   :  { %v1129_v38 = vpop.eup %1128 }
 0x1c4   :  { %1086 = vmatmul.msk.f32.gmra.mxu2 %vm784_vm2, %v39_v22  ;;  %v1625_v22 = vpop.f32.mrf.mxu2 }
 0x1c5   :  { %v429_v17 = vpop.f32.mrf.mxu1 }
 0x1c8   :  { %1069 = vmatmul.msk.f32.gmra.mxu1 %vm165_vm1, %v429_v17  ;;  %v473_v17 = vmul.f32 %v1557_v53, %v225_v55 }
 0x1cc   :  { %1087 = vmatmul.msk.f32.gmra.mxu2 %vm784_vm2, %v40_v61 }
 0x1cd   :  { %v432_v18 = vpop.f32.mrf.mxu1 }
 0x1d0   :  { %1070 = vmatmul.msk.f32.gmra.mxu1 %vm165_vm1, %v432_v18  ;;  %v243_v18 = vmul.f32 %v1123_v8, %v242_v56 }
 0x1d2   :  { %v244_v28 = vmul.f32 %v243_v18, %v1526_v62  ;;  %v272_v18 = vand.u32 2147483648, %v1547_v6 }
 0x1d4   :  { %v246_v29 = vsel %vm245_vm7, %v1526_v62, %v244_v28  ;;  %1088 = vmatmul.msk.f32.gmra.mxu2 %vm784_vm2, %v41_v41 }
 0x1d5   :  { %v435_v21 = vpop.f32.mrf.mxu1 }
 0x1d8   :  { %1071 = vmatmul.msk.f32.gmra.mxu1 %vm165_vm1, %v435_v21  ;;  %v263_v21 = vmul.f32 %v1127_v16, %v1547_v6 }
 0x1da   :  { %v264_v32 = vmul.f32 %v1127_v16, %v263_v21 }
 0x1dc   :  { %v265_v54 = vmul.f32 0.5, %v264_v32  ;;  %1089 = vmatmul.msk.f32.gmra.mxu2 %vm784_vm2, %v42_v20  ;;  %v45_v20 = vld [vmem:[%s1893_s2 + $0x48] sm:$0xff] }
 0x1dd   :  { %v438_v23 = vpop.f32.mrf.mxu1 }
 0x1de   :  { %v266_v14 = vsub.f32 1.5, %v265_v54 }
 0x1e0   :  { %1072 = vmatmul.msk.f32.gmra.mxu1 %vm165_vm1, %v438_v23  ;;  %v236_v23 = vand.u32 2147483648, %v1522_v59  ;;  %v1583_v59 = vpop.xlane.xlu0 %185  ;;  %v267_v7 = vmul.f32 %v1127_v16, %v266_v14 }
 0x1e1   :  { %1130 = vrsqrt.f32 %v1583_v59  ;;  %vm293_vm0 = vcmp.eq.f32.partialorder %v1583_v59, inf }
 0x1e2   :  { %1132 = vrsqrt.f32 %v1598_v39  ;;  %v268_v4 = vmul.f32 %v267_v7, %v1547_v6  ;;  %v573_v7 = vpop.f32.mrf.mxu0 }
 0x1e5   :  { %v441_v26 = vpop.f32.mrf.mxu1 }
 0x1e6   :  { %1073 = vmatmul.msk.f32.vlgmr.msra.gmra.mxu3 %vm165_vm1, %v441_v26  ;;  %v559_v26 = vadd.f32 %v558_v47, %v473_v17 }
 0x1ed   :  { %v444_v27 = vpop.f32.mrf.mxu1 }
 0x1ee   :  { %1074 = vmatmul.msk.f32.gmra.mxu3 %vm165_vm1, %v444_v27  ;;  %v237_v27 = vsel %vm235_vm6, %v236_v23, %v234_v19 }
 0x1ef   :  { %v474_v42 = vmul.f32 %v1557_v53, %v237_v27 }
 0x1f1   :  { %v562_v10 = vadd.f32 %v561_v24, %v474_v42 }
 0x1f5   :  { %v447_v30 = vpop.f32.mrf.mxu1 }
 0x1f6   :  { %1075 = vmatmul.msk.f32.gmra.mxu3 %vm165_vm1, %v447_v30 }
 0x1fd   :  { %v450_v34 = vpop.f32.mrf.mxu1 }
 0x1fe   :  { %1076 = vmatmul.msk.f32.gmra.mxu3 %vm165_vm1, %v450_v34 }
 0x205   :  { %v453_v46 = vpop.f32.mrf.mxu1 }
 0x206   :  { %1077 = vmatmul.msk.f32.gmra.mxu3 %vm165_vm1, %v453_v46 }
 0x20d   :  { %v456_v58 = vpop.f32.mrf.mxu1 }
 0x20e   :  { %1078 = vmatmul.msk.f32.gmra.mxu3 %vm165_vm1, %v456_v58  ;;  %v275_v58 = vmul.f32 %v1129_v38, %v1560_v0 }
 0x215   :  { %v459_v63 = vpop.f32.mrf.mxu1 }
 0x216   :  { %1079 = vmatmul.msk.f32.gmra.mxu3 %vm165_vm1, %v459_v63  ;;  %v248_v63 = vand.u32 2147483648, %v1526_v62  ;;  %v258_v62 = vsel %vm257_vm10, %v1538_v36, %v256_v13  ;;  %v1615_v36 = vpop.xlane.xlu2 %191 }
 0x217   :  { %v261_v47 = vsel %vm259_vm11, %v260_v44, %v258_v62  ;;  %1134 = vrsqrt.f32 %v1615_v36  ;;  %vm317_vm5 = vcmp.eq.f32.partialorder %v1615_v36, inf  ;;  %vm319_vm6 = vcmp.eq.f32.partialorder %v1615_v36, 0.0 }
 0x218   :  { %v249_v9 = vsel %vm247_vm9, %v248_v63, %v246_v29  ;;  %v476_v55 = vmul.f32 %v1557_v53, %v261_v47 }
 0x219   :  { %v475_v33 = vmul.f32 %v1557_v53, %v249_v9 }
 0x21a   :  { %v568_v19 = vadd.f32 %v567_v3, %v476_v55 }
 0x21b   :  { %v565_v45 = vadd.f32 %v564_v11, %v475_v33  ;;  %v1650_v33 = vpop.xlane.xlu1 %197 }
 0x21c   :  { %vm341_vm10 = vcmp.eq.f32.partialorder %v1650_v33, inf  ;;  %vm343_vm11 = vcmp.eq.f32.partialorder %v1650_v33, 0.0 }
 0x21d   :  { %v462_v15 = vpop.f32.mrf.mxu1 }
 0x21e   :  { %1080 = vmatmul.msk.f32.gmra.mxu3 %vm165_vm1, %v462_v15  ;;  %v276_v15 = vmul.f32 %v1129_v38, %v275_v58  ;;  %v43_v58 = vld [vmem:[%s1893_s2 + $0x38] sm:$0xff] }
 0x21f   :  { %1090 = vmatmul.msk.f32.gmra.mxu2 %vm784_vm2, %v43_v58  ;;  %v46_v58 = vld [vmem:[%s1893_s2 + $0x50] sm:$0xff] }
 0x220   :  { %v277_v37 = vmul.f32 0.5, %v276_v15 }
 0x222   :  { %v278_v49 = vsub.f32 1.5, %v277_v37 }
 0x224   :  { %v279_v57 = vmul.f32 %v1129_v38, %v278_v49 }
 0x225   :  { %v465_v43 = vpop.f32.mrf.mxu1 }
 0x226   :  { %1081 = vmatmul.msk.f32.gmra.mxu3 %vm165_vm1, %v465_v43  ;;  %v1131_v43 = vpop.eup %1130  ;;  %v280_v24 = vmul.f32 %v279_v57, %v1560_v0 }
 0x227   :  { %v287_v51 = vmul.f32 %v1131_v43, %v1583_v59  ;;  %v1133_v17 = vpop.eup %1132 }
 0x228   :  { %v1135_v32 = vpop.eup %1134 }
 0x229   :  { %v288_v1 = vmul.f32 %v1131_v43, %v287_v51  ;;  %v311_v61 = vmul.f32 %v1135_v32, %v1615_v36 }
 0x22b   :  { %v289_v27 = vmul.f32 0.5, %v288_v1  ;;  %v312_v14 = vmul.f32 %v1135_v32, %v311_v61 }
 0x22d   :  { %v468_v2 = vpop.f32.mrf.mxu1  ;;  %v290_v38 = vsub.f32 1.5, %v289_v27 }
 0x22e   :  { %1082 = vmatmul.msk.f32.gmra.mxu3 %vm165_vm1, %v468_v2  ;;  %v270_v2 = vsel %vm269_vm12, %v1547_v6, %v268_v4  ;;  %v296_v4 = vand.u32 2147483648, %v1583_v59  ;;  %vm295_vm1 = vcmp.eq.f32.partialorder %v1583_v59, 0.0 }
 0x22f   :  { %v273_v21 = vsel %vm271_vm13, %v272_v18, %v270_v2  ;;  %v1667_v2 = vpop.xlane.xlu2 %200 }
 0x230   :  { %v477_v28 = vmul.f32 %v1557_v53, %v273_v21  ;;  %v308_v21 = vand.u32 2147483648, %v1598_v39  ;;  %vm353_vm12 = vcmp.eq.f32.partialorder %v1667_v2, inf  ;;  %vm355_vm13 = vcmp.eq.f32.partialorder %v1667_v2, 0.0 }
 0x232   :  { %v571_v54 = vadd.f32 %v570_v31, %v477_v28 }
 0x235   :  { %v674_v30 = vpop.f32.mrf.mxu1 }
 0x236   :  { %v722_v34 = vadd.f32 %v674_v30, %v559_v26  ;;  %v299_v26 = vmul.f32 %v1133_v17, %v1598_v39 }
 0x238   :  { %v739_v46 = vadd.f32 %v1574_v25, %v722_v34  ;;  %v282_v34 = vsel %vm281_vm14, %v1560_v0, %v280_v24  ;;  %v300_v42 = vmul.f32 %v1133_v17, %v299_v26 }
 0x23a   :  { %v755_v60 = vmax.f32 %v739_v46, 0.0  ;;  %v1634_v46 = vpop.xlane.xlu0 %194  ;;  %v301_v9 = vmul.f32 0.5, %v300_v42 }
 0x23b   :  { %1136 = vrsqrt.f32 %v1634_v46  ;;  %vm329_vm7 = vcmp.eq.f32.partialorder %v1634_v46, inf  ;;  %vm331_vm9 = vcmp.eq.f32.partialorder %v1634_v46, 0.0 }
 0x23c   :  { %1099 = vmatmul.msk.f32.vlgmr.msrb.gmra.mxu3 %vm898_vm8, %v755_v60  ;;  %v285_v60 = vsel %vm283_vm15, %v284_v50, %v282_v34  ;;  %1138 = vrsqrt.f32 %v1650_v33 }
 0x23d   :  { %v677_v12 = vpop.f32.mrf.mxu1  ;;  %v478_v0 = vmul.f32 %v1557_v53, %v285_v60  ;;  %1140 = vrsqrt.f32 %v1667_v2  ;;  %v320_v60 = vand.u32 2147483648, %v1615_v36 }
 0x23e   :  { %v723_v8 = vadd.f32 %v677_v12, %v562_v10  ;;  %v291_v10 = vmul.f32 %v1131_v43, %v290_v38  ;;  %v1645_v12 = vpop.f32.mrf.mxu2 }
 0x23f   :  { %v574_v37 = vadd.f32 %v573_v7, %v478_v0 }
 0x240   :  { %v740_v35 = vadd.f32 %v1574_v25, %v723_v8  ;;  %v292_v15 = vmul.f32 %v291_v10, %v1583_v59  ;;  %v302_v8 = vsub.f32 1.5, %v301_v9 }
 0x241   :  { %v1137_v62 = vpop.eup %1136 }
 0x242   :  { %v756_v40 = vmax.f32 %v740_v35, 0.0  ;;  %v294_v43 = vsel %vm293_vm0, %v1583_v59, %v292_v15  ;;  %v303_v44 = vmul.f32 %v1133_v17, %v302_v8  ;;  %v1139_v1 = vpop.eup %1138  ;;  %v1683_v27 = vpop.xlane.xlu0 %203 }
 0x243   :  { %v297_v51 = vsel %vm295_vm1, %v296_v4, %v294_v43  ;;  %v335_v18 = vmul.f32 %v1139_v1, %v1650_v33  ;;  %1142 = vrsqrt.f32 %v1683_v27  ;;  %v332_v43 = vand.u32 2147483648, %v1634_v46 }
 0x244   :  { %1100 = vmatmul.msk.f32.gmra.mxu3 %vm898_vm8, %v756_v40  ;;  %v313_v40 = vmul.f32 0.5, %v312_v14  ;;  %v304_v55 = vmul.f32 %v303_v44, %v1598_v39  ;;  %v1702_v14 = vpop.xlane.xlu1 %206  ;;  %vm365_vm14 = vcmp.eq.f32.partialorder %v1683_v27, inf  ;;  %vm367_vm15 = vcmp.eq.f32.partialorder %v1683_v27, 0.0 }
 0x245   :  { %v680_v48 = vpop.f32.mrf.mxu1  ;;  %1144 = vrsqrt.f32 %v1702_v14  ;;  %vm377_vm0 = vcmp.eq.f32.partialorder %v1702_v14, inf  ;;  %vm379_vm1 = vcmp.eq.f32.partialorder %v1702_v14, 0.0 }
 0x246   :  { %v724_v52 = vadd.f32 %v680_v48, %v565_v45  ;;  %v323_v45 = vmul.f32 %v1137_v62, %v1634_v46  ;;  %v44_v48 = vld [vmem:[%s1893_s2 + $0x40] sm:$0xff]  ;;  %v1664_v3 = vpop.f32.mrf.mxu2  ;;  %v306_v17 = vsel %vm305_vm3, %v1598_v39, %v304_v55 }
 0x247   :  { %1091 = vmatmul.msk.f32.gmra.mxu2 %vm784_vm2, %v44_v48  ;;  %v309_v24 = vsel %vm307_vm4, %v308_v21, %v306_v17  ;;  %v48_v17 = vld [vmem:[%s1893_s2 + $0x60] sm:$0xff] }
 0x248   :  { %v741_v56 = vadd.f32 %v1574_v25, %v724_v52  ;;  %v314_v52 = vsub.f32 1.5, %v313_v40  ;;  %v480_v38 = vmul.f32 %v1557_v53, %v309_v24 }
 0x24a   :  { %v757_v16 = vmax.f32 %v741_v56, 0.0  ;;  %v324_v56 = vmul.f32 %v1137_v62, %v323_v45  ;;  %v315_v59 = vmul.f32 %v1135_v32, %v314_v52  ;;  %v1141_v32 = vpop.eup %1140  ;;  %v580_v61 = vadd.f32 %v1625_v22, %v480_v38 }
 0x24b   :  { %v1143_v9 = vpop.eup %1142 }
 0x24c   :  { %1101 = vmatmul.msk.f32.gmra.mxu3 %vm898_vm8, %v757_v16  ;;  %v479_v16 = vmul.f32 %v1557_v53, %v297_v51  ;;  %v316_v26 = vmul.f32 %v315_v59, %v1615_v36  ;;  %v1721_v51 = vpop.xlane.xlu2 %209  ;;  %v1145_v55 = vpop.eup %1144 }
 0x24d   :  { %v683_v23 = vpop.f32.mrf.mxu1  ;;  %1146 = vrsqrt.f32 %v1721_v51  ;;  %vm389_vm3 = vcmp.eq.f32.partialorder %v1721_v51, inf }
 0x24e   :  { %v725_v6 = vadd.f32 %v683_v23, %v568_v19  ;;  %v325_v19 = vmul.f32 0.5, %v324_v56  ;;  %v577_v23 = vadd.f32 %v1604_v5, %v479_v16  ;;  %v1685_v34 = vpop.f32.mrf.mxu2  ;;  %v318_v5 = vsel %vm317_vm5, %v1615_v36, %v316_v26 }
 0x24f   :  { %1092 = vmatmul.msk.f32.gmra.mxu2 %vm784_vm2, %v45_v20  ;;  %v359_v36 = vmul.f32 %v1143_v9, %v1683_v27  ;;  %v371_v16 = vmul.f32 %v1145_v55, %v1702_v14 }
 0x250   :  { %v742_v30 = vadd.f32 %v1574_v25, %v725_v6  ;;  %v326_v28 = vsub.f32 1.5, %v325_v19 }
 0x252   :  { %v758_v29 = vmax.f32 %v742_v30, 0.0  ;;  %v336_v30 = vmul.f32 %v1139_v1, %v335_v18  ;;  %v327_v42 = vmul.f32 %v1137_v62, %v326_v28  ;;  %v344_v18 = vand.u32 2147483648, %v1650_v33  ;;  %v1740_v28 = vpop.xlane.xlu0 %212 }
 0x253   :  { %1148 = vrsqrt.f32 %v1740_v28  ;;  %vm401_vm4 = vcmp.eq.f32.partialorder %v1740_v28, inf  ;;  %vm403_vm5 = vcmp.eq.f32.partialorder %v1740_v28, 0.0 }
 0x254   :  { %1102 = vmatmul.msk.f32.gmra.mxu3 %vm898_vm8, %v758_v29  ;;  %v347_v29 = vmul.f32 %v1141_v32, %v1667_v2  ;;  %v337_v50 = vmul.f32 0.5, %v336_v30 }
 0x255   :  { %v686_v63 = vpop.f32.mrf.mxu1 }
 0x256   :  { %v726_v11 = vadd.f32 %v686_v63, %v571_v54  ;;  %v321_v63 = vsel %vm319_vm6, %v320_v60, %v318_v5  ;;  %v338_v0 = vsub.f32 1.5, %v337_v50  ;;  %v1708_v22 = vpop.f32.mrf.mxu2  ;;  %v356_v50 = vand.u32 2147483648, %v1667_v2 }
 0x257   :  { %1093 = vmatmul.msk.f32.gmra.mxu2 %vm784_vm2, %v46_v58  ;;  %v481_v8 = vmul.f32 %v1557_v53, %v321_v63 }
 0x258   :  { %v743_v13 = vadd.f32 %v1574_v25, %v726_v11  ;;  %v328_v11 = vmul.f32 %v327_v42, %v1634_v46  ;;  %v339_v7 = vmul.f32 %v1139_v1, %v338_v0 }
 0x259   :  { %v583_v44 = vadd.f32 %v1645_v12, %v481_v8 }
 0x25a   :  { %v759_v35 = vmax.f32 %v743_v13, 0.0  ;;  %v348_v13 = vmul.f32 %v1141_v32, %v347_v29  ;;  %v330_v62 = vsel %vm329_vm7, %v1634_v46, %v328_v11  ;;  %v340_v4 = vmul.f32 %v339_v7, %v1650_v33  ;;  %v49_v29 = vld [vmem:[%s1893_s2 + $0x68] sm:$0xff] }
 0x25b   :  { %v333_v45 = vsel %vm331_vm9, %v332_v43, %v330_v62  ;;  %v50_v62 = vld [vmem:[%s1893_s2 + $0x70] sm:$0xff]  ;;  %v368_v7 = vand.u32 2147483648, %v1683_v27 }
 0x25c   :  { %1103 = vmatmul.msk.f32.gmra.mxu3 %vm898_vm8, %v759_v35  ;;  %v482_v56 = vmul.f32 %v1557_v53, %v333_v45  ;;  %v342_v46 = vsel %vm341_vm10, %v1650_v33, %v340_v4 }
 0x25d   :  { %v689_v41 = vpop.f32.mrf.mxu1  ;;  %v345_v21 = vsel %vm343_vm11, %v344_v18, %v342_v46 }
 0x25e   :  { %v727_v47 = vadd.f32 %v689_v41, %v574_v37  ;;  %v349_v37 = vmul.f32 0.5, %v348_v13  ;;  %v47_v41 = vld [vmem:[%s1893_s2 + $0x58] sm:$0xff]  ;;  %v1733_v19 = vpop.f32.mrf.mxu2  ;;  %v586_v20 = vadd.f32 %v1664_v3, %v482_v56 }
 0x25f   :  { %1094 = vmatmul.msk.f32.gmra.mxu2 %vm784_vm2, %v47_v41  ;;  %v51_v56 = vld [vmem:[%s1893_s2 + $0x78] sm:$0xff] }
 0x260   :  { %v744_v49 = vadd.f32 %v1574_v25, %v727_v47  ;;  %v360_v47 = vmul.f32 %v1143_v9, %v359_v36 }
 0x262   :  { %v760_v57 = vmax.f32 %v744_v49, 0.0  ;;  %v350_v49 = vsub.f32 1.5, %v349_v37  ;;  %v361_v12 = vmul.f32 0.5, %v360_v47 }
 0x264   :  { %1104 = vmatmul.msk.f32.gmra.mxu3 %vm898_vm8, %v760_v57  ;;  %v351_v1 = vmul.f32 %v1141_v32, %v350_v49  ;;  %v483_v32 = vmul.f32 %v1557_v53, %v345_v21 }
 0x266   :  { %v352_v26 = vmul.f32 %v351_v1, %v1667_v2 }
 0x267   :  { %1095 = vmatmul.msk.f32.gmra.mxu2 %vm784_vm2, %v48_v17 }
 0x268   :  { %v354_v33 = vsel %vm353_vm12, %v1667_v2, %v352_v26 }
 0x269   :  { %v692_v6 = vpop.f32.mrf.mxu3  ;;  %v357_v58 = vsel %vm355_vm13, %v356_v50, %v354_v33 }
 0x26a   :  { %v728_v31 = vadd.f32 %v692_v6, %v577_v23  ;;  %v362_v23 = vsub.f32 1.5, %v361_v12  ;;  %v372_v6 = vmul.f32 %v1145_v55, %v371_v16  ;;  %v484_v13 = vmul.f32 %v1557_v53, %v357_v58 }
 0x26c   :  { %v745_v39 = vadd.f32 %v1574_v25, %v728_v31  ;;  %v1147_v31 = vpop.eup %1146  ;;  %v363_v3 = vmul.f32 %v1143_v9, %v362_v23  ;;  %v592_v37 = vadd.f32 %v1708_v22, %v484_v13 }
 0x26d   :  { %v383_v5 = vmul.f32 %v1147_v31, %v1721_v51  ;;  %v1149_v0 = vpop.eup %1148 }
 0x26e   :  { %v761_v54 = vmax.f32 %v745_v39, 0.0  ;;  %v373_v39 = vmul.f32 0.5, %v372_v6  ;;  %v364_v60 = vmul.f32 %v363_v3, %v1683_v27 }
 0x26f   :  { %1096 = vmatmul.msk.f32.gmra.mxu2 %vm784_vm2, %v49_v29 }
 0x270   :  { %1105 = vmatmul.msk.f32.gmra.mxu3 %vm898_vm8, %v761_v54  ;;  %v589_v54 = vadd.f32 %v1685_v34, %v483_v32  ;;  %v374_v9 = vsub.f32 1.5, %v373_v39  ;;  %v366_v34 = vsel %vm365_vm14, %v1683_v27, %v364_v60 }
 0x271   :  { %v695_v10 = vpop.f32.mrf.mxu3 }
 0x272   :  { %v729_v15 = vadd.f32 %v695_v10, %v580_v61  ;;  %v597_v61 = vpop.f32.mrf.mxu2  ;;  %v384_v10 = vmul.f32 %v1147_v31, %v383_v5  ;;  %v375_v8 = vmul.f32 %v1145_v55, %v374_v9 }
 0x274   :  { %v746_v35 = vadd.f32 %v1574_v25, %v729_v15  ;;  %v385_v2 = vmul.f32 0.5, %v384_v10  ;;  %v376_v43 = vmul.f32 %v375_v8, %v1702_v14 }
 0x276   :  { %v762_v40 = vmax.f32 %v746_v35, 0.0  ;;  %v395_v35 = vmul.f32 %v1149_v0, %v1740_v28  ;;  %v386_v45 = vsub.f32 1.5, %v385_v2  ;;  %v378_v22 = vsel %vm377_vm0, %v1702_v14, %v376_v43 }
 0x277   :  { %1097 = vmatmul.msk.f32.gmra.mxu2 %vm784_vm2, %v50_v62 }
 0x278   :  { %1106 = vmatmul.msk.f32.gmra.mxu3 %vm898_vm8, %v762_v40  ;;  %v369_v40 = vsel %vm367_vm15, %v368_v7, %v366_v34  ;;  %v387_v27 = vmul.f32 %v1147_v31, %v386_v45 }
 0x279   :  { %v698_v48 = vpop.f32.mrf.mxu3  ;;  %v485_v4 = vmul.f32 %v1557_v53, %v369_v40 }
 0x27a   :  { %v730_v52 = vadd.f32 %v698_v48, %v583_v44  ;;  %v396_v44 = vmul.f32 %v1149_v0, %v395_v35  ;;  %v600_v48 = vpop.f32.mrf.mxu2  ;;  %v388_v16 = vmul.f32 %v387_v27, %v1721_v51 }
 0x27b   :  { %v595_v12 = vadd.f32 %v1733_v19, %v485_v4 }
 0x27c   :  { %v747_v57 = vadd.f32 %v1574_v25, %v730_v52  ;;  %v397_v52 = vmul.f32 0.5, %v396_v44  ;;  %v390_v23 = vsel %vm389_vm3, %v1721_v51, %v388_v16 }
 0x27e   :  { %v763_v59 = vmax.f32 %v747_v57, 0.0  ;;  %v380_v57 = vand.u32 2147483648, %v1702_v14  ;;  %v392_v14 = vand.u32 2147483648, %v1721_v51 }
 0x27f   :  { %1098 = vmatmul.msk.f32.gmra.mxu2 %vm784_vm2, %v51_v56  ;;  %vm391_vm2 = vcmp.eq.f32.partialorder %v1721_v51, 0.0 }
 0x280   :  { %1107 = vmatmul.msk.f32.gmra.mxu3 %vm898_vm8, %v763_v59  ;;  %v381_v46 = vsel %vm379_vm1, %v380_v57, %v378_v22  ;;  %v398_v59 = vsub.f32 1.5, %v397_v52  ;;  %v393_v6 = vsel %vm391_vm2, %v392_v14, %v390_v23 }
 0x281   :  { %v701_v24 = vpop.f32.mrf.mxu3  ;;  %v486_v18 = vmul.f32 %v1557_v53, %v381_v46 }
 0x282   :  { %v731_v30 = vadd.f32 %v701_v24, %v586_v20  ;;  %v603_v21 = vpop.f32.mrf.mxu2  ;;  %v399_v19 = vmul.f32 %v1149_v0, %v398_v59 }
 0x283   :  { %v598_v26 = vadd.f32 %v597_v61, %v486_v18 }
 0x284   :  { %v748_v38 = vadd.f32 %v1574_v25, %v731_v30  ;;  %v400_v31 = vmul.f32 %v399_v19, %v1740_v28 }
 0x286   :  { %v764_v42 = vmax.f32 %v748_v38, 0.0  ;;  %v487_v38 = vmul.f32 %v1557_v53, %v393_v6  ;;  %v402_v39 = vsel %vm401_vm4, %v1740_v28, %v400_v31 }
 0x288   :  { %1108 = vmatmul.msk.f32.gmra.mxu3 %vm898_vm8, %v764_v42  ;;  %v404_v42 = vand.u32 2147483648, %v1740_v28  ;;  %v601_v51 = vadd.f32 %v600_v48, %v487_v38 }
 0x289   :  { %v704_v63 = vpop.f32.mrf.mxu3 }
 0x28a   :  { %v732_v11 = vadd.f32 %v704_v63, %v589_v54  ;;  %v850_v33 = vpop.f32.mrf.mxu2  ;;  %v405_v29 = vsel %vm403_vm5, %v404_v42, %v402_v39 }
 0x28b   :  { %v488_v58 = vmul.f32 %v1557_v53, %v405_v29 }
 0x28c   :  { %v749_v15 = vadd.f32 %v1574_v25, %v732_v11 }
 0x28d   :  { %v604_v10 = vadd.f32 %v603_v21, %v488_v58 }
 0x28e   :  { %v765_v36 = vmax.f32 %v749_v15, 0.0  ;;  %v1807_v15 = vld [vmem:[%s1892_s4 + $0x60] ss:$0 sm:$0xff] }
 0x290   :  { %1109 = vmatmul.msk.f32.gmra.mxu3 %vm898_vm8, %v765_v36 }
 0x291   :  { %v707_v41 = vpop.f32.mrf.mxu3 }
 0x292   :  { %v733_v47 = vadd.f32 %v707_v41, %v592_v37  ;;  %v853_v63 = vpop.f32.mrf.mxu2 }
 0x294   :  { %v750_v49 = vadd.f32 %v1574_v25, %v733_v47 }
 0x296   :  { %v766_v55 = vmax.f32 %v750_v49, 0.0 }
 0x298   :  { %1110 = vmatmul.msk.f32.gmra.mxu3 %vm898_vm8, %v766_v55 }
 0x299   :  { %v710_v1 = vpop.f32.mrf.mxu3 }
 0x29a   :  { %v734_v17 = vadd.f32 %v710_v1, %v595_v12  ;;  %v856_v28 = vpop.f32.mrf.mxu2 }
 0x29c   :  { %v751_v20 = vadd.f32 %v1574_v25, %v734_v17 }
 0x29e   :  { %v767_v24 = vmax.f32 %v751_v20, 0.0 }
 0x2a0   :  { %1111 = vmatmul.msk.f32.gmra.mxu3 %vm898_vm8, %v767_v24 }
 0x2a1   :  { %v713_v30 = vpop.f32.mrf.mxu3 }
 0x2a2   :  { %v735_v32 = vadd.f32 %v713_v30, %v598_v26  ;;  %v859_v8 = vpop.f32.mrf.mxu2 }
 0x2a4   :  { %v752_v3 = vadd.f32 %v1574_v25, %v735_v32 }
 0x2a6   :  { %v768_v5 = vmax.f32 %v752_v3, 0.0 }
 0x2a8   :  { %1112 = vmatmul.msk.f32.gmra.mxu3 %vm898_vm8, %v768_v5 }
 0x2a9   :  { %v716_v50 = vpop.f32.mrf.mxu3 }
 0x2aa   :  { %v736_v54 = vadd.f32 %v716_v50, %v601_v51  ;;  %v862_v62 = vpop.f32.mrf.mxu2 }
 0x2ac   :  { %v753_v60 = vadd.f32 %v1574_v25, %v736_v54 }
 0x2ae   :  { %v769_v61 = vmax.f32 %v753_v60, 0.0 }
 0x2b0   :  { %1113 = vmatmul.msk.f32.gmra.mxu3 %vm898_vm8, %v769_v61 }
 0x2b1   :  { %v719_v9 = vpop.f32.mrf.mxu3 }
 0x2b2   :  { %v737_v11 = vadd.f32 %v719_v9, %v604_v10  ;;  %v865_v43 = vpop.f32.mrf.mxu2 }
 0x2b4   :  { %v754_v0 = vadd.f32 %v1574_v25, %v737_v11 }
 0x2b6   :  { %v770_v13 = vmax.f32 %v754_v0, 0.0 }
 0x2b8   :  { %1114 = vmatmul.msk.f32.gmra.mxu3 %vm898_vm8, %v770_v13 }
 0x2ba   :  { %v868_v48 = vpop.f32.mrf.mxu2 }
 0x2bf   :  { %v964_v53 = vpop.f32.mrf.mxu3 }
 0x2c0   :  { %v965_v34 = vadd.f32 %v964_v53, %v850_v33 }
 0x2c2   :  { %v1013_v2 = vadd.f32 %v1807_v15, %v965_v34  ;;  %v871_v27 = vpop.f32.mrf.mxu2 }
 0x2c4   :  { %1029 = vst.msk [vmem:[%s1894_s5] sm:$0xff] %vm898_vm8, %v1013_v2 }
 0x2c7   :  { %v967_v25 = vpop.f32.mrf.mxu3 }
 0x2c8   :  { %v968_v35 = vadd.f32 %v967_v25, %v853_v63 }
 0x2ca   :  { %v1014_v36 = vadd.f32 %v1807_v15, %v968_v35  ;;  %v874_v57 = vpop.f32.mrf.mxu2 }
 0x2cc   :  { %1030 = vst.msk [vmem:[%s1894_s5 + $0x8] sm:$0xff] %vm898_vm8, %v1014_v36 }
 0x2cf   :  { %v970_v7 = vpop.f32.mrf.mxu3 }
 0x2d0   :  { %v971_v37 = vadd.f32 %v970_v7, %v856_v28 }
 0x2d2   :  { %v1015_v40 = vadd.f32 %v1807_v15, %v971_v37  ;;  %v877_v59 = vpop.f32.mrf.mxu2 }
 0x2d4   :  { %1031 = vst.msk [vmem:[%s1894_s5 + $0x10] sm:$0xff] %vm898_vm8, %v1015_v40 }
 0x2d7   :  { %v973_v41 = vpop.f32.mrf.mxu3 }
 0x2d8   :  { %v974_v44 = vadd.f32 %v973_v41, %v859_v8 }
 0x2da   :  { %v1016_v45 = vadd.f32 %v1807_v15, %v974_v44  ;;  %v880_v23 = vpop.f32.mrf.mxu2 }
 0x2dc   :  { %1032 = vst.msk [vmem:[%s1894_s5 + $0x18] sm:$0xff] %vm898_vm8, %v1016_v45 }
 0x2df   :  { %v976_v47 = vpop.f32.mrf.mxu3 }
 0x2e0   :  { %v977_v4 = vadd.f32 %v976_v47, %v862_v62 }
 0x2e2   :  { %v1017_v49 = vadd.f32 %v1807_v15, %v977_v4  ;;  %v883_v26 = vpop.f32.mrf.mxu2 }
 0x2e4   :  { %1033 = vst.msk [vmem:[%s1894_s5 + $0x20] sm:$0xff] %vm898_vm8, %v1017_v49 }
 0x2e7   :  { %v979_v22 = vpop.f32.mrf.mxu3 }
 0x2e8   :  { %v980_v52 = vadd.f32 %v979_v22, %v865_v43 }
 0x2ea   :  { %v1018_v55 = vadd.f32 %v1807_v15, %v980_v52  ;;  %v886_v38 = vpop.f32.mrf.mxu2 }
 0x2ec   :  { %1034 = vst.msk [vmem:[%s1894_s5 + $0x28] sm:$0xff] %vm898_vm8, %v1018_v55 }
 0x2f2   :  { %v889_v42 = vpop.f32.mrf.mxu2 }
 0x2f3   :  { %v982_v56 = vpop.f32.mrf.mxu3 }
 0x2f4   :  { %v983_v12 = vadd.f32 %v982_v56, %v868_v48 }
 0x2f6   :  { %v1019_v46 = vadd.f32 %v1807_v15, %v983_v12 }
 0x2f8   :  { %1035 = vst.msk [vmem:[%s1894_s5 + $0x30] sm:$0xff] %vm898_vm8, %v1019_v46 }
 0x2fa   :  { %v892_v58 = vpop.f32.mrf.mxu2 }
 0x2fb   :  { %v985_v1 = vpop.f32.mrf.mxu3 }
 0x2fc   :  { %v986_v16 = vadd.f32 %v985_v1, %v871_v27 }
 0x2fe   :  { %v1020_v17 = vadd.f32 %v1807_v15, %v986_v16 }
 0x300   :  { %1036 = vst.msk [vmem:[%s1894_s5 + $0x38] sm:$0xff] %vm898_vm8, %v1020_v17 }
 0x302   :  { %v895_v10 = vpop.f32.mrf.mxu2 }
 0x303   :  { %v988_v18 = vpop.f32.mrf.mxu3 }
 0x304   :  { %v989_v20 = vadd.f32 %v988_v18, %v874_v57 }
 0x306   :  { %v1021_v21 = vadd.f32 %v1807_v15, %v989_v20 }
 0x308   :  { %1037 = vst.msk [vmem:[%s1894_s5 + $0x40] sm:$0xff] %vm898_vm8, %v1021_v21 }
 0x30b   :  { %v991_v19 = vpop.f32.mrf.mxu3 }
 0x30c   :  { %v992_v24 = vadd.f32 %v991_v19, %v877_v59 }
 0x30e   :  { %v1022_v14 = vadd.f32 %v1807_v15, %v992_v24 }
 0x310   :  { %1038 = vst.msk [vmem:[%s1894_s5 + $0x48] sm:$0xff] %vm898_vm8, %v1022_v14 }
 0x313   :  { %v994_v6 = vpop.f32.mrf.mxu3 }
 0x314   :  { %v995_v30 = vadd.f32 %v994_v6, %v880_v23 }
 0x316   :  { %v1023_v31 = vadd.f32 %v1807_v15, %v995_v30 }
 0x318   :  { %1039 = vst.msk [vmem:[%s1894_s5 + $0x50] sm:$0xff] %vm898_vm8, %v1023_v31 }
 0x31b   :  { %v997_v32 = vpop.f32.mrf.mxu3 }
 0x31c   :  { %v998_v3 = vadd.f32 %v997_v32, %v883_v26 }
 0x31e   :  { %v1024_v33 = vadd.f32 %v1807_v15, %v998_v3 }
 0x320   :  { %1040 = vst.msk [vmem:[%s1894_s5 + $0x58] sm:$0xff] %vm898_vm8, %v1024_v33 }
 0x323   :  { %v1000_v39 = vpop.f32.mrf.mxu3 }
 0x324   :  { %v1001_v5 = vadd.f32 %v1000_v39, %v886_v38 }
 0x326   :  { %v1025_v51 = vadd.f32 %v1807_v15, %v1001_v5 }
 0x328   :  { %1041 = vst.msk [vmem:[%s1894_s5 + $0x60] sm:$0xff] %vm898_vm8, %v1025_v51 }
 0x32b   :  { %v1003_v29 = vpop.f32.mrf.mxu3 }
 0x32c   :  { %v1004_v50 = vadd.f32 %v1003_v29, %v889_v42 }
 0x32e   :  { %v1026_v54 = vadd.f32 %v1807_v15, %v1004_v50 }
 0x330   :  { %1042 = vst.msk [vmem:[%s1894_s5 + $0x68] sm:$0xff] %vm898_vm8, %v1026_v54 }
 0x333   :  { %v1006_v60 = vpop.f32.mrf.mxu3 }
 0x334   :  { %v1007_v61 = vadd.f32 %v1006_v60, %v892_v58 }
 0x336   :  { %v1027_v63 = vadd.f32 %v1807_v15, %v1007_v61 }
 0x338   :  { %1043 = vst.msk [vmem:[%s1894_s5 + $0x70] sm:$0xff] %vm898_vm8, %v1027_v63 }
 0x33b   :  { %v1009_v9 = vpop.f32.mrf.mxu3 }
 0x33c   :  { %v1010_v11 = vadd.f32 %v1009_v9, %v895_v10 }
 0x33e   :  { %v1028_v0 = vadd.f32 %v1807_v15, %v1010_v11 }
 0x340   :  { %1044 = vst.msk [vmem:[%s1894_s5 + $0x78] sm:$0xff] %vm898_vm8, %v1028_v0 }

</bundles_post_ra>
